<compile_context>
chip_gen: v7x
topology: tpu7x:2x2x1
jax: 0.10.0
libtpu: 0.0.40
codegen_flags: <defaults>
</compile_context>

<pallas_src>
import functools
import math

import jax
import jax.numpy as jnp
from jax import lax
from jax.experimental import pallas as pl
from jax.experimental.pallas import tpu as pltpu

NEG_INF = float("-inf")


def sdpa_kernel(q_ref, k_ref, v_ref, mask_ref, out_ref, attn_ref, *, inv_temperature):
    # Blocks are (1, Lq, Dk) / (1, Lk, Dk) / (1, Lk, Dv) / (1, Lq, Lk) for one batch element.
    q = q_ref[0].astype(jnp.float32)          # (Lq, Dk)
    k = k_ref[0].astype(jnp.float32)          # (Lk, Dk)
    v = v_ref[0].astype(jnp.float32)          # (Lk, Dv)

    # scores = (q @ k^T) / temperature, contracting Dk of both operands directly
    # (no transposed copy of k is materialized).
    s = lax.dot_general(
        q, k, (((1,), (1,)), ((), ())),
        preferred_element_type=jnp.float32) * inv_temperature      # (Lq, Lk)

    # masked_fill(mask, -inf)
    m = mask_ref[0]                           # (Lq, Lk) int32
    s = jnp.where(m != 0, NEG_INF, s)

    # numerically stable softmax over the key axis (dim=2 in the PyTorch module)
    s_max = jnp.max(s, axis=-1, keepdims=True)
    e = jnp.exp(s - s_max)
    p = e / jnp.sum(e, axis=-1, keepdims=True)                     # (Lq, Lk)

    # Both outputs are lane-dense (last dim on the lane axis): plain unmasked-ish stores.
    attn_ref[0] = p.astype(attn_ref.dtype)
    out_ref[0] = jnp.dot(p, v, preferred_element_type=jnp.float32).astype(out_ref.dtype)


def scaled_dot_product_attention(q, k, v, temperature, mask=None):
    """q: (B, Lq, Dk), k: (B, Lk, Dk), v: (B, Lk, Dv), mask: (B, Lq, Lk) bool or None.

    Returns (output (B, Lq, Dv), attn (B, Lq, Lk)) — same as the PyTorch module.
    """
    B, Lq, Dk = q.shape
    Bk, Lk, Dk2 = k.shape
    Bv, Lv, Dv = v.shape
    assert Bk == B and Bv == B and Dk2 == Dk and Lv == Lk

    if mask is None:
        mask_i32 = jnp.zeros((B, Lq, Lk), jnp.int32)
    else:
        mask_i32 = mask.astype(jnp.int32)

    kernel = functools.partial(sdpa_kernel, inv_temperature=float(1.0 / temperature))

    out, attn = pl.pallas_call(
        kernel,
        out_shape=(
            jax.ShapeDtypeStruct((B, Lq, Dv), q.dtype),
            jax.ShapeDtypeStruct((B, Lq, Lk), jnp.float32),
        ),
        grid=(B,),
        in_specs=[
            pl.BlockSpec((1, Lq, Dk), lambda b: (b, 0, 0)),   # q
            pl.BlockSpec((1, Lk, Dk), lambda b: (b, 0, 0)),   # k
            pl.BlockSpec((1, Lk, Dv), lambda b: (b, 0, 0)),   # v
            pl.BlockSpec((1, Lq, Lk), lambda b: (b, 0, 0)),   # mask
        ],
        out_specs=(
            pl.BlockSpec((1, Lq, Dv), lambda b: (b, 0, 0)),   # output
            pl.BlockSpec((1, Lq, Lk), lambda b: (b, 0, 0)),   # attn
        ),
        compiler_params=pltpu.CompilerParams(
            dimension_semantics=("parallel",)),
    )(q, k, v, mask_i32)
    return out, attn


def sdpa_ref(q, k, v, temperature, mask=None):
    """Pure-JAX reference with identical semantics to the PyTorch module."""
    attn = jnp.einsum("bqd,bkd->bqk", q, k) / temperature
    if mask is not None:
        attn = jnp.where(mask, -jnp.inf, attn)
    attn = jax.nn.softmax(attn, axis=-1)
    out = jnp.einsum("bqk,bkd->bqd", attn, v)
    return out, attn


if __name__ == "__main__":
    B, Lq, Lk, Dk, Dv = 2, 8, 8, 32, 32
    temperature = math.sqrt(Dk)

    key = jax.random.PRNGKey(0)
    kq, kk, kv = jax.random.split(key, 3)
    q = jax.random.normal(kq, (B, Lq, Dk), jnp.float32)
    k = jax.random.normal(kk, (B, Lk, Dk), jnp.float32)
    v = jax.random.normal(kv, (B, Lk, Dv), jnp.float32)
    # mask out the last 2 key positions of batch element 1 (padding positions)
    mask = jnp.zeros((B, Lq, Lk), jnp.bool_).at[1, :, -2:].set(True)

    out, attn = scaled_dot_product_attention(q, k, v, temperature, mask)
    jax.block_until_ready((out, attn))

    out_r, attn_r = sdpa_ref(q, k, v, temperature, mask)
    assert out.shape == (B, Lq, Dv) and attn.shape == (B, Lq, Lk)
    assert jnp.allclose(attn, attn_r, atol=1e-5, rtol=1e-5), "attn mismatch vs reference"
    assert jnp.allclose(out, out_r, atol=1e-5, rtol=1e-5), "output mismatch vs reference"

    print("KERNEL_OK")
</pallas_src>

<mosaic_0001>
module attributes {stable_mosaic.version = 11 : i64} {
  func.func @sdpa_kernel(%arg0: i32, %arg1: memref<1x8x32xf32, #tpu.memory_space<vmem>>, %arg2: memref<1x8x32xf32, #tpu.memory_space<vmem>>, %arg3: memref<1x8x32xf32, #tpu.memory_space<vmem>>, %arg4: memref<1x8x8xi32, #tpu.memory_space<vmem>>, %arg5: memref<1x8x32xf32, #tpu.memory_space<vmem>>, %arg6: memref<1x8x8xf32, #tpu.memory_space<vmem>>) attributes {dimension_semantics = [#tpu.dimension_semantics<parallel>], iteration_bounds = array<i64: 2>, scalar_prefetch = 0 : i64, scratch_operands = 0 : i64, tpu.core_type = #tpu.core_type<tc>, window_params = [{transform_indices = @transform_0, window_bounds = array<i64: 1, 8, 32>}, {transform_indices = @transform_1, window_bounds = array<i64: 1, 8, 32>}, {transform_indices = @transform_2, window_bounds = array<i64: 1, 8, 32>}, {transform_indices = @transform_3, window_bounds = array<i64: 1, 8, 8>}, {transform_indices = @transform_4, window_bounds = array<i64: 1, 8, 32>}, {transform_indices = @transform_5, window_bounds = array<i64: 1, 8, 8>}]} {
    %c0 = arith.constant 0 : index
    %c0_0 = arith.constant 0 : index
    %c0_1 = arith.constant 0 : index
    %0 = vector.load %arg1[%c0, %c0_0, %c0_1] : memref<1x8x32xf32, #tpu.memory_space<vmem>>, vector<1x8x32xf32>
    %1 = vector.shape_cast %0 : vector<1x8x32xf32> to vector<8x32xf32>
    %c0_2 = arith.constant 0 : index
    %c0_3 = arith.constant 0 : index
    %c0_4 = arith.constant 0 : index
    %2 = vector.load %arg2[%c0_2, %c0_3, %c0_4] : memref<1x8x32xf32, #tpu.memory_space<vmem>>, vector<1x8x32xf32>
    %3 = vector.shape_cast %2 : vector<1x8x32xf32> to vector<8x32xf32>
    %c0_5 = arith.constant 0 : index
    %c0_6 = arith.constant 0 : index
    %c0_7 = arith.constant 0 : index
    %4 = vector.load %arg3[%c0_5, %c0_6, %c0_7] : memref<1x8x32xf32, #tpu.memory_space<vmem>>, vector<1x8x32xf32>
    %5 = vector.shape_cast %4 : vector<1x8x32xf32> to vector<8x32xf32>
    %cst = arith.constant dense<0.000000e+00> : vector<8x8xf32>
    %6 = tpu.matmul %1, %3, %cst {dimension_numbers = #tpu.dot_dimension_numbers<[1], [1], [0], [0], [0, 0, 1, 0], [], []>} : vector<8x32xf32>, vector<8x32xf32>, vector<8x8xf32> -> vector<8x8xf32>
    %cst_8 = arith.constant 0.176776692 : f32
    %7 = vector.broadcast %cst_8 : f32 to vector<8x8xf32>
    %8 = arith.mulf %6, %7 : vector<8x8xf32>
    %c0_9 = arith.constant 0 : index
    %c0_10 = arith.constant 0 : index
    %c0_11 = arith.constant 0 : index
    %9 = vector.load %arg4[%c0_9, %c0_10, %c0_11] : memref<1x8x8xi32, #tpu.memory_space<vmem>>, vector<1x8x8xi32>
    %10 = vector.shape_cast %9 : vector<1x8x8xi32> to vector<8x8xi32>
    %c0_i32 = arith.constant 0 : i32
    %11 = vector.broadcast %c0_i32 : i32 to vector<8x8xi32>
    %12 = arith.cmpi ne, %10, %11 : vector<8x8xi32>
    %cst_12 = arith.constant 0xFF800000 : f32
    %13 = vector.broadcast %cst_12 : f32 to vector<8x8xf32>
    %14 = arith.select %12, %13, %8 : vector<8x8xi1>, vector<8x8xf32>
    %cst_13 = arith.constant dense<0xFF800000> : vector<8xf32>
    %15 = vector.multi_reduction <maximumf>, %14, %cst_13 [1] : vector<8x8xf32> to vector<8xf32>
    %16 = vector.shape_cast %15 : vector<8xf32> to vector<8x1xf32>
    %17 = vector.broadcast %16 : vector<8x1xf32> to vector<8x8xf32>
    %18 = arith.subf %14, %17 : vector<8x8xf32>
    %19 = math.exp %18 : vector<8x8xf32>
    %cst_14 = arith.constant dense<0.000000e+00> : vector<8xf32>
    %20 = vector.multi_reduction <add>, %19, %cst_14 [1] : vector<8x8xf32> to vector<8xf32>
    %21 = vector.shape_cast %20 : vector<8xf32> to vector<8x1xf32>
    %22 = vector.broadcast %21 : vector<8x1xf32> to vector<8x8xf32>
    %23 = arith.divf %19, %22 : vector<8x8xf32>
    %c0_15 = arith.constant 0 : index
    %c0_16 = arith.constant 0 : index
    %c0_17 = arith.constant 0 : index
    %24 = vector.load %arg6[%c0_15, %c0_16, %c0_17] : memref<1x8x8xf32, #tpu.memory_space<vmem>>, vector<1x8x8xf32>
    %25 = vector.shape_cast %24 : vector<1x8x8xf32> to vector<8x8xf32>
    %26 = vector.shape_cast %23 : vector<8x8xf32> to vector<1x8x8xf32>
    tpu.vector_store %arg6[%c0_15, %c0_16, %c0_17], %26 {strides = array<i32>} : memref<1x8x8xf32, #tpu.memory_space<vmem>>, vector<1x8x8xf32>,
    %cst_18 = arith.constant dense<0.000000e+00> : vector<8x32xf32>
    %27 = tpu.matmul %23, %5, %cst_18 {dimension_numbers = #tpu.dot_dimension_numbers<[1], [0], [0], [1], [0, 0, 1, 1], [], []>} : vector<8x8xf32>, vector<8x32xf32>, vector<8x32xf32> -> vector<8x32xf32>
    %c0_19 = arith.constant 0 : index
    %c0_20 = arith.constant 0 : index
    %c0_21 = arith.constant 0 : index
    %28 = vector.load %arg5[%c0_19, %c0_20, %c0_21] : memref<1x8x32xf32, #tpu.memory_space<vmem>>, vector<1x8x32xf32>
    %29 = vector.shape_cast %28 : vector<1x8x32xf32> to vector<8x32xf32>
    %30 = vector.shape_cast %27 : vector<8x32xf32> to vector<1x8x32xf32>
    tpu.vector_store %arg5[%c0_19, %c0_20, %c0_21], %30 {strides = array<i32>} : memref<1x8x32xf32, #tpu.memory_space<vmem>>, vector<1x8x32xf32>,
    return
  }
  func.func @transform_0(%arg0: i32) -> (i32, i32, i32) {
    %c0_i32 = arith.constant 0 : i32
    %c0_i32_0 = arith.constant 0 : i32
    %c0_i32_1 = arith.constant 0 : i32
    return %arg0, %c0_i32, %c0_i32_0 : i32, i32, i32
  }
  func.func @transform_1(%arg0: i32) -> (i32, i32, i32) {
    %c0_i32 = arith.constant 0 : i32
    %c0_i32_0 = arith.constant 0 : i32
    %c0_i32_1 = arith.constant 0 : i32
    return %arg0, %c0_i32, %c0_i32_0 : i32, i32, i32
  }
  func.func @transform_2(%arg0: i32) -> (i32, i32, i32) {
    %c0_i32 = arith.constant 0 : i32
    %c0_i32_0 = arith.constant 0 : i32
    %c0_i32_1 = arith.constant 0 : i32
    return %arg0, %c0_i32, %c0_i32_0 : i32, i32, i32
  }
  func.func @transform_3(%arg0: i32) -> (i32, i32, i32) {
    %c0_i32 = arith.constant 0 : i32
    %c0_i32_0 = arith.constant 0 : i32
    %c0_i32_1 = arith.constant 0 : i32
    return %arg0, %c0_i32, %c0_i32_0 : i32, i32, i32
  }
  func.func @transform_4(%arg0: i32) -> (i32, i32, i32) {
    %c0_i32 = arith.constant 0 : i32
    %c0_i32_0 = arith.constant 0 : i32
    %c0_i32_1 = arith.constant 0 : i32
    return %arg0, %c0_i32, %c0_i32_0 : i32, i32, i32
  }
  func.func @transform_5(%arg0: i32) -> (i32, i32, i32) {
    %c0_i32 = arith.constant 0 : i32
    %c0_i32_0 = arith.constant 0 : i32
    %c0_i32_1 = arith.constant 0 : i32
    return %arg0, %c0_i32, %c0_i32_0 : i32, i32, i32
  }
}

</mosaic_0001>

<bundles_post_ra>
// kernel: tpu_custom_call.1
= control target key start
LH: loop header
LB: loop body
LE: loop exit
PB: predicated region body
PF: predicated region fallthrough
CT: control target
= control target key end

     0   :  { %s1412_s0 = inlined_call_operand.hbm [shape: f32[2,8,32], index: 0, kind: input, shape index: {}]   ;;  %s1413_s1 = inlined_call_operand.hbm [shape: f32[2,8,32], index: 1, kind: input, shape index: {}]   ;;  %s1414_s2 = inlined_call_operand.hbm [shape: f32[2,8,32], index: 2, kind: input, shape index: {}]   ;;  %s1415_s3 = inlined_call_operand.hbm [shape: s32[2,8,8], index: 3, kind: input, shape index: {}]   ;;  %s1416_s4 = inlined_call_operand.hbm [shape: f32[2,8,32], index: 4, kind: output, shape index: {0}]   ;;  %s1417_s5 = inlined_call_operand.hbm [shape: f32[2,8,8], index: 5, kind: output, shape index: {1}]  }
   0x1   :  { %1425 = sst [smem:[#allocation21_spill]] %s1413_s1 }
   0x2   :  { %11 = vsyncpa [#allocation3], 0 }
   0x3   :  { %13 = vsyncpa [#allocation3 + $0x1], 0 }
   0x4   :  { %14 = vsyncpa [#allocation6], 0 }
   0x5   :  { %16 = vsyncpa [#allocation6 + $0x1], 0 }
   0x6   :  { %17 = vsyncpa [#allocation9], 0 }
   0x7   :  { %19 = vsyncpa [#allocation9 + $0x1], 0 }
   0x8   :  { %20 = vsyncpa [#allocation4], 0 }
   0x9   :  { %22 = vsyncpa [#allocation4 + $0x1], 0 }
   0xa   :  { %23 = vsyncpa [#allocation12], 0 }
   0xb   :  { %25 = vsyncpa [#allocation12 + $0x1], 0  ;;  %s1109_s18 = smov 0   ;;  %s1111_s19 = smov 0  }
   0xc   :  { %s1113_s20 = smov 0   ;;  %s1115_s21 = smov 0  }
   0xd LB: > { %1426 = sst [smem:[#allocation18_spill]] %s1065_s20  ;;  %s1130_s22 = sadd.s32 4294967295, %s1069_s21   ;;  %s1069_s21 = sphi %s1115_s21, %s1445_s21   ;;  %s1065_s20 = sphi %s1113_s20, %s1447_s20   ;;  %s1061_s19 = sphi %s1111_s19, %s1449_s19   ;;  %s1057_s18 = sphi %s1109_s18, %s1448_s18  }
   0xe   : > { %s730_s23 = sadd.s32 4294967294, %s1069_s21   ;;  %s1134_s24 = sadd.s32 1, %s1069_s21  }
   0xf   : > { %1427 = sst [smem:[#allocation19_spill]] %s1134_s24  ;;  %s38_s25 = sadd.s32 1, %s1065_s20 }
  0x10   : > { %s35_s26 = ssub.s32 %s1069_s21, %s1134_s24  ;;  %p45_p0 = scmp.ne.s32.totalorder %s1065_s20, %s1061_s19 }
  0x11   : > { %p36_p1 = scmp.eq.s32.totalorder %s35_s26, 0  ;;  %p46_p2 = scmp.eq.s32.totalorder %s1069_s21, 0 }
  0x12   : > { %p51_p3 = scmp.ne.s32.totalorder %s1061_s19, %s1057_s18  ;;  %p52_p4 = scmp.eq.s32.totalorder %s1130_s22, 0 }
  0x13   : > { %s1146_s27 = scalar_select %p36_p1, %s1065_s20, %s38_s25  }
  0x14   : > { %p47_p5 = por %p46_p2, %p45_p0  ;;  %p1148_p6 = por %p52_p4, %p51_p3 }
  0x15   : > { %1428 = sst [smem:[#allocation20_spill]] %s1146_s27  ;;  %p153_p7 = scmp.eq.s32.totalorder %s1130_s22, 1 }
  0x16   : > { %s1429_s28 = scalar_select %p1148_p6, 1, 0 }
  0x17   : > { %p159_p8 = scmp.eq.s32.totalorder %s730_s23, 1  ;;  %p803_p10 = scmp.lt.s32.totalorder %s1069_s21, 2 }
  0x18   : > { %p1155_p11 = por %p153_p7, %p45_p0  ;;  %s1164_s6 = sand.u32 1, %s1065_s20  }
  0x19   : > { %p1159_p12 = por %p159_p8, %p51_p3  ;;  %s1167_s7 = sshll.u32 %s1069_s21, 7 }
  0x1a   : > { %s1430_s29 = scalar_select %p1155_p11, 1, 0 }
  0x1b   : > { %s1431_s30 = scalar_select %p1159_p12, 1, 0 }
  0x1c   : > { %s1170_s8 = sshll.u32 %s1164_s6, 3  ;;  %p1172_p13 = pnand %p803_p10, %p47_p5 }
  0x1d   : > { %s223_s10 = sand.u32 1, %s1069_s21   ;;  %s1433_s1 = sld [smem:[#allocation21_spill]] }
  0x1e   : > { %s1432_s9 = scalar_select %p1172_p13, 1, 0 }
  0x1f   : > { %s227_s14 = scalar_lea.vmem [#allocation5], %s1170_s8  ;;  %s1187_s16 = scalar_lea.sflag [#allocation6], %s223_s10 }
  0x20   : > { %s234_s15 = sshll.u32 %s227_s14, 4  ;;  %p1193_p2 = pneg %p1172_p13  ;;  %s1184_s15 = int_to_ptr.vmem [resolvable:$true] %s234_s15 }
  0x23   : > { %s1181_s13 = scalar_lea.hbm %s1433_s1, %s1167_s7  ;;  %s848_s11 = scalar_lea.hbm %s1433_s1, 256 }
  0x24   : > { %s843_s17 = scalar_lea.hbm %s1181_s13, 128  ;;  %p849_p5 = scmp.lt.u32.totalorder %s1181_s13, %s1433_s1 }
  0x25   : > { %p844_p1 = scmp.ne.s32.totalorder %s1181_s13, %s843_s17  ;;  %p850_p7 = scmp.lt.u32.totalorder %s848_s11, %s843_s17 }
  0x26   : > { %p852_p10 = scmp.lt.u32.totalorder %s843_s17, %s1181_s13 }
  0x27   : > { %p846_p3 = pnand %p1193_p2, %p844_p1  ;;  %p851_p8 = por %p850_p7, %p849_p5 }
  0x29   : > { %p847_p4 = pneg %p846_p3  ;;  %p853_p9 = por %p852_p10, %p851_p8 }
  0x2b   : > { %p854_p0 = pnand %p853_p9, %p847_p4 }
  0x2d   : > { %857 = shalt.err (!%p854_p0)
}
  0x2e   : > { %s858_s10 = scalar_lea.vmem %s1184_s15, 128  ;;  %s1071_s25 = smov [#allocation5]  }
  0x2f   : > { %p859_p1 = scmp.ne.s32.totalorder %s1184_s15, %s858_s10  ;;  %s863_s26 = sshll.u32 %s1071_s25, 4  ;;  %s864_s26 = int_to_ptr.vmem [resolvable:$false] %s863_s26 }
  0x30   : > { %s865_s12 = scalar_lea.vmem %s864_s26, 256  ;;  %p866_p11 = scmp.lt.s32.totalorder %s1184_s15, %s864_s26 }
  0x31   : > { %p861_p3 = pnand %p859_p1, %p1193_p2  ;;  %p867_p6 = scmp.lt.s32.totalorder %s865_s12, %s858_s10 }
  0x33   : > { %p862_p12 = pneg %p861_p3  ;;  %p868_p5 = por %p867_p6, %p866_p11 }
  0x35   : > { %p869_p7 = pnand %p868_p5, %p862_p12 }
  0x37   : > { %872 = shalt.err (!%p869_p7)
}
  0x38   : > { %789 = dma.hbm_to_vmem [thread:$0]  (!%p1172_p13), %s1181_s13, 128, %s1184_s15, %s1187_s16  }
  0x39   : > { %p275_p9 = scmp.lt.s32.totalorder %s1069_s21, 3  ;;  %s1222_s14 = scalar_lea.hbm %s1412_s0, %s1167_s7 }
  0x3a   : > { %p1435_p6 = scmp.ge.s32.totalorder %s1069_s21, 1  ;;  %s209_s25 = scalar_lea.vmem [#allocation2], %s1170_s8 }
  0x3b   : > { %s216_s26 = sshll.u32 %s209_s25, 4  ;;  %s206_s12 = scalar_lea.sflag [#allocation3], %s1164_s6  ;;  %s217_s26 = int_to_ptr.vmem [resolvable:$true] %s216_s26 }
  0x3c   : > { %p1226_p11 = pnand %p1435_p6, %p275_p9  ;;  %s873_s13 = scalar_lea.hbm %s1222_s14, 128 }
  0x3d   : > { %p874_p12 = scmp.ne.s32.totalorder %s1222_s14, %s873_s13  ;;  %s878_s11 = scalar_lea.hbm %s1412_s0, 256 }
  0x3e   : > { %s1436_s10 = scalar_select %p1226_p11, 1, 0 }
  0x3f   : > { %p876_p0 = pnand %p874_p12, %p1193_p2  ;;  %p879_p8 = scmp.lt.u32.totalorder %s1222_s14, %s1412_s0 }
  0x40   : > { %p880_p10 = scmp.lt.u32.totalorder %s878_s11, %s873_s13  ;;  %p882_p3 = scmp.lt.u32.totalorder %s873_s13, %s1222_s14 }
  0x41   : > { %p877_p4 = pneg %p876_p0 }
  0x42   : > { %p881_p1 = por %p880_p10, %p879_p8 }
  0x44   : > { %p883_p5 = por %p882_p3, %p881_p1 }
  0x46   : > { %p884_p7 = pnand %p883_p5, %p877_p4 }
  0x48   : > { %887 = shalt.err (!%p884_p7)
}
  0x49   : > { %s888_s25 = scalar_lea.vmem %s217_s26, 128  ;;  %s1072_s20 = smov [#allocation2]  }
  0x4a   : > { %p889_p9 = scmp.ne.s32.totalorder %s217_s26, %s888_s25  ;;  %s893_s24 = sshll.u32 %s1072_s20, 4  ;;  %s894_s24 = int_to_ptr.vmem [resolvable:$false] %s893_s24 }
  0x4b   : > { %s895_s15 = scalar_lea.vmem %s894_s24, 256  ;;  %p896_p0 = scmp.lt.s32.totalorder %s217_s26, %s894_s24 }
  0x4c   : > { %p891_p6 = pnand %p889_p9, %p1193_p2  ;;  %p897_p11 = scmp.lt.s32.totalorder %s895_s15, %s888_s25 }
  0x4e   : > { %p892_p12 = pneg %p891_p6  ;;  %p898_p13 = por %p897_p11, %p896_p0 }
  0x50   : > { %p899_p8 = pnand %p898_p13, %p892_p12 }
  0x52   : > { %902 = shalt.err (!%p899_p8)
}
  0x53   : > { %p1437_p10 = scmp.ne.s32.totalorder %s1432_s9, 0  ;;  %s1253_s13 = scalar_lea.hbm %s1414_s2, %s1167_s7 }
  0x54   : > { %s245_s20 = scalar_lea.vmem [#allocation7], %s1170_s8  ;;  %s903_s17 = scalar_lea.hbm %s1253_s13, 128 }
  0x55   : > { %786 = dma.hbm_to_vmem [thread:$0]  (!%p1437_p10), %s1222_s14, 128, %s217_s26, %s206_s12  }
  0x56   : > { %s252_s24 = sshll.u32 %s245_s20, 4  ;;  %p904_p13 = scmp.ne.s32.totalorder %s1253_s13, %s903_s17  ;;  %s253_s24 = int_to_ptr.vmem [resolvable:$true] %s252_s24 }
  0x57   : > { %s908_s14 = scalar_lea.hbm %s1414_s2, 256  ;;  %p909_p1 = scmp.lt.u32.totalorder %s1253_s13, %s1414_s2 }
  0x58   : > { %p906_p11 = pnand %p904_p13, %p1193_p2  ;;  %p910_p3 = scmp.lt.u32.totalorder %s908_s14, %s903_s17 }
  0x59   : > { %p912_p7 = scmp.lt.u32.totalorder %s903_s17, %s1253_s13 }
  0x5a   : > { %p907_p4 = pneg %p906_p11  ;;  %p911_p5 = por %p910_p3, %p909_p1 }
  0x5c   : > { %p913_p9 = por %p912_p7, %p911_p5 }
  0x5e   : > { %p914_p6 = pnand %p913_p9, %p907_p4 }
  0x60   : > { %917 = shalt.err (!%p914_p6)
}
  0x61   : > { %s918_s15 = scalar_lea.vmem %s253_s24, 128  ;;  %s1073_s1 = smov [#allocation7]  }
  0x62   : > { %p919_p12 = scmp.ne.s32.totalorder %s253_s24, %s918_s15  ;;  %s923_s27 = sshll.u32 %s1073_s1, 4  ;;  %s924_s27 = int_to_ptr.vmem [resolvable:$false] %s923_s27 }
  0x63   : > { %s925_s20 = scalar_lea.vmem %s924_s27, 256  ;;  %p926_p13 = scmp.lt.s32.totalorder %s253_s24, %s924_s27 }
  0x64   : > { %p921_p0 = pnand %p919_p12, %p1193_p2  ;;  %p927_p11 = scmp.lt.s32.totalorder %s925_s20, %s918_s15 }
  0x66   : > { %p922_p8 = pneg %p921_p0  ;;  %p928_p10 = por %p927_p11, %p926_p13 }
  0x68   : > { %p929_p1 = pnand %p928_p10, %p922_p8 }
  0x6a   : > { %932 = shalt.err (!%p929_p1)
}
  0x6b   : > { %p1438_p3 = scmp.ne.s32.totalorder %s1432_s9, 0  ;;  %s1278_s25 = scalar_lea.hbm %s1415_s3, %s1167_s7 }
  0x6c   : > { %s263_s14 = scalar_lea.vmem [#allocation8], %s1170_s8  ;;  %s260_s12 = scalar_lea.sflag [#allocation9], %s1164_s6 }
  0x6d   : > { %792 = dma.hbm_to_vmem [thread:$0]  (!%p1438_p3), %s1253_s13, 128, %s253_s24, %s1187_s16  }
  0x6e   : > { %s270_s26 = sshll.u32 %s263_s14, 4  ;;  %s933_s15 = scalar_lea.hbm %s1278_s25, 128  ;;  %s271_s26 = int_to_ptr.vmem [resolvable:$true] %s270_s26 }
  0x6f   : > { %p934_p10 = scmp.ne.s32.totalorder %s1278_s25, %s933_s15  ;;  %s938_s13 = scalar_lea.hbm %s1415_s3, 256 }
  0x70   : > { %p939_p7 = scmp.lt.u32.totalorder %s1278_s25, %s1415_s3  ;;  %p940_p9 = scmp.lt.u32.totalorder %s938_s13, %s933_s15 }
  0x71   : > { %p936_p4 = pnand %p934_p10, %p1193_p2  ;;  %p942_p12 = scmp.lt.u32.totalorder %s933_s15, %s1278_s25 }
  0x72   : > { %p941_p6 = por %p940_p9, %p939_p7 }
  0x73   : > { %p937_p5 = pneg %p936_p4 }
  0x74   : > { %p943_p0 = por %p942_p12, %p941_p6 }
  0x76   : > { %p944_p8 = pnand %p943_p0, %p937_p5 }
  0x78   : > { %947 = shalt.err (!%p944_p8)
}
  0x79   : > { %s948_s6 = scalar_lea.vmem %s271_s26, 128  ;;  %s1074_s8 = smov [#allocation8]  }
  0x7a   : > { %p949_p13 = scmp.ne.s32.totalorder %s271_s26, %s948_s6  ;;  %s953_s27 = sshll.u32 %s1074_s8, 4  ;;  %s954_s27 = int_to_ptr.vmem [resolvable:$false] %s953_s27 }
  0x7b   : > { %s955_s20 = scalar_lea.vmem %s954_s27, 256  ;;  %p956_p10 = scmp.lt.s32.totalorder %s271_s26, %s954_s27 }
  0x7c   : > { %p951_p11 = pnand %p949_p13, %p1193_p2  ;;  %p957_p4 = scmp.lt.s32.totalorder %s955_s20, %s948_s6 }
  0x7e   : > { %p952_p1 = pneg %p951_p11  ;;  %p958_p3 = por %p957_p4, %p956_p10 }
  0x80   : > { %p959_p7 = pnand %p958_p3, %p952_p1 }
  0x82   : > { %962 = shalt.err (!%p959_p7)
}
  0x83   : > { %p1439_p9 = scmp.ne.s32.totalorder %s1432_s9, 0  ;;  %p1440_p5 = scmp.ne.s32.totalorder %s1436_s10, 0 }
  0x84   : > { %s1302_s23 = sand.u32 (!%p1440_p5), 1, %s1061_s19   ;;  %p1441_p2 = scmp.ne.s32.totalorder (!%p1440_p5), %s1429_s28, 0 }
  0x85   : > { %795 = dma.hbm_to_vmem [thread:$0]  (!%p1439_p9), %s1278_s25, 128, %s271_s26, %s260_s12  }
  0x86   : > { %279 = sbr.rel (%p1440_p5) target bundleno = 909 (0x38d), region = 36  ;;  %s1305_s17 = sshll.u32 (!%p1440_p5), %s1302_s23, 3 }
  0x87   : > { %s282_s11 = scalar_lea.sflag (!%p1440_p5), [#allocation3], %s1302_s23  ;;  %s285_s14 = scalar_lea.vmem (!%p1440_p5), [#allocation2], %s1305_s17 }
  0x8d   : > { %1036 = dma.done.wait (%p1441_p2), %s282_s11, 128  }
  0x8e   : > { %1038 = vsyncadd (%p1441_p2), %s282_s11, 4294967168  ;;  %s290_s9 = sand.u32 1, %s1130_s22   ;;  %s294_s25 = scalar_lea.vmem [#allocation5], %s1305_s17 }
  0x8f   : > { %s291_s10 = scalar_lea.sflag [#allocation6], %s290_s9 }
  0x90   : > { %1040 = dma.done.wait (%p1441_p2), %s291_s10, 256  }
  0x91   : > { %1042 = vsyncadd (%p1441_p2), %s291_s10, 4294967040  ;;  %s303_s26 = scalar_lea.vmem [#allocation7], %s1305_s17  ;;  %s309_s12 = scalar_lea.sflag [#allocation9], %s1302_s23 }
  0x92   : > { %s312_s15 = scalar_lea.vmem [#allocation8], %s1305_s17 }
  0x93   : > { %1044 = dma.done.wait (%p1441_p2), %s309_s12, 128  }
  0x94   : > { %1046 = vsyncadd (%p1441_p2), %s309_s12, 4294967168  ;;  %v1075_v0 = vmov 0.0   ;;  %vm1076_vm0 = vmmov 0   ;;  %vm362_vm1 = vcmask 261120   ;;  %v360_v1 = vld [vmem:[%s294_s25] sm:$0xff]  ;;  %v359_v2 = vld [vmem:[%s285_s14] sm:$0xff] }
  0x95   : > { %761 = vmatprep.subr.mxu0 %v1075_v0  ;;  %763 = vmatprep.mubr.msk.f32.mxu0 %vm1076_vm0, %v1075_v0  ;;  %v440_v3 = vld [vmem:[%s312_s15] sm:$0xff]  ;;  %vm443_vm3 = vcmask 64512   ;;  %v361_v14 = vld [vmem:[%s303_s26] sm:$0xff]  ;;  %s358_s28 = scalar_lea.vmem [#allocation11], %s1305_s17  ;;  %s753_s1 = sshll.u32 %s1130_s22, 7 }
  0x96   : > { %766 = vmatprep.subr.mxu1 %v1075_v0  ;;  %768 = vmatprep.mubr.msk.f32.mxu1 %vm1076_vm0, %v1075_v0  ;;  %vm441_vm2 = vcmp.ne.s32.totalorder %v440_v3, 0  ;;  %s1341_s24 = scalar_lea.hbm %s1417_s5, %s753_s1  ;;  %s562_s7 = sshll.u32 %s358_s28, 4  ;;  %s563_s7 = int_to_ptr.vmem [resolvable:$true] %s562_s7 }
  0x97   : > { %762 = vmatpush3.xpose.msk.msra.mxu0 %vm362_vm1, %v360_v1  ;;  %767 = vmatpush3.msra.mxu1 %v361_v14  ;;  %s536_s6 = scalar_lea.sflag [#allocation12], %s1302_s23  ;;  %s963_s8 = scalar_lea.vmem %s563_s7, 128 }
  0x98   : > { %p964_p3 = scmp.ne.s32.totalorder %s563_s7, %s963_s8  ;;  %p1442_p6 = scmp.ne.s32.totalorder %s1430_s29, 0 }
  0x99   : > { %s1077_s27 = smov [#allocation11]  }
  0x9a   : > { %764 = vmatmul.mubr.msk.f32.vlgmr.msra.gmra.mrb[0].mxu0 %vm362_vm1, %v359_v2  ;;  %p965_p12 = pnand %p964_p3, %p1442_p6  ;;  %s967_s20 = sshll.u32 %s1077_s27, 4  ;;  %s968_s20 = int_to_ptr.vmem [resolvable:$false] %s967_s20 }
  0x9b   : > { %s969_s11 = scalar_lea.vmem %s968_s20, 256  ;;  %p970_p8 = scmp.lt.s32.totalorder %s563_s7, %s968_s20 }
  0x9c   : > { %p966_p0 = pneg %p965_p12  ;;  %p971_p13 = scmp.lt.s32.totalorder %s969_s11, %s963_s8 }
  0x9e   : > { %p972_p11 = por %p971_p13, %p970_p8 }
  0xa0   : > { %p973_p1 = pnand %p972_p11, %p966_p0 }
 0x16d   : > { %v435_v4 = vpop.f32.mrb[0].mxu0 }
 0x16e   : > { %v439_v5 = vmul.f32 0.17677669, %v435_v4  ;;  %v765_v6 = vpop.f32.mrb[1].mxu0 }
 0x170   : > { %v442_v7 = vsel %vm441_vm2, -inf, %v439_v5 }
 0x171   : > { %v444_v8 = vsel %vm443_vm3, %v442_v7, -inf }
 0x172   : > { %445 = vmax.xlane.f32.xlu0 %v444_v8 }
 0x1ff   : > { %v446_v9 = vpop.xlane.xlu0 %445 }
 0x200   : > { %v447_v10 = vsub.f32 %v442_v7, %v446_v9 }
 0x202   : > { %v448_v11 = vmul.f32 1.442695, %v447_v10 }
 0x204   : > { %839 = vpow2.f32 %v448_v11 }
 0x20e   : > { %v840_v12 = vpop.eup %839 }
 0x20f   : > { %v450_v13 = vsel %vm443_vm3, %v840_v12, 0.0 }
 0x210   : > { %451 = vadd.xlane.f32.xlu0 %v450_v13 }
 0x29d   : > { %v452_v15 = vpop.xlane.xlu0 %451 }
 0x29e   : > { %841 = vrcp.f32 %v452_v15 }
 0x2a8   : > { %v842_v16 = vpop.eup %841 }
 0x2a9   : > { %v454_v17 = vmul.f32 %v842_v16, %v840_v12 }
 0x2ab   : > { %769 = vmatmul.mubr.msk.f32.vlgmr.msra.gmra.mrb[0].mxu1 %vm443_vm3, %v454_v17  ;;  %455 = vst.msk [vmem:[%s358_s28] sm:$0xff] %vm443_vm3, %v454_v17 }
 0x2ac   : > { %976 = shalt.err (!%p973_p1)
}
 0x2ad   : > { %s977_s14 = scalar_lea.hbm %s1341_s24, 128  ;;  %s981_s25 = scalar_lea.hbm %s1417_s5, 256 }
 0x2ae   : > { %p978_p10 = scmp.ne.s32.totalorder %s1341_s24, %s977_s14  ;;  %p982_p9 = scmp.lt.u32.totalorder %s1341_s24, %s1417_s5 }
 0x2af   : > { %p983_p5 = scmp.lt.u32.totalorder %s981_s25, %s977_s14  ;;  %p985_p3 = scmp.lt.u32.totalorder %s977_s14, %s1341_s24 }
 0x2b0   : > { %p979_p4 = pnand %p978_p10, %p1442_p6 }
 0x2b1   : > { %p984_p2 = por %p983_p5, %p982_p9 }
 0x2b2   : > { %p980_p7 = pneg %p979_p4 }
 0x2b3   : > { %p986_p12 = por %p985_p3, %p984_p2 }
 0x2b5   : > { %p987_p0 = pnand %p986_p12, %p980_p7 }
 0x2b7   : > { %990 = shalt.err (!%p987_p0)
}
 0x2b8   : > { %780 = dma.vmem_to_hbm [thread:$0]  (%p1442_p6), %s563_s7, 128, %s1341_s24, %s536_s6  }
 0x2b9   : > { %s351_s15 = scalar_lea.vmem [#allocation10], %s1305_s17  ;;  %s1367_s8 = scalar_lea.hbm %s1416_s4, %s753_s1 }
 0x2ba   : > { %s549_s28 = sshll.u32 %s351_s15, 4  ;;  %s531_s27 = scalar_lea.sflag [#allocation4], %s1302_s23  ;;  %s1369_s28 = int_to_ptr.vmem [resolvable:$true] %s549_s28 }
 0x2bb   : > { %s991_s20 = scalar_lea.vmem %s1369_s28, 128  ;;  %s1078_s22 = smov [#allocation10]  }
 0x2bc   : > { %p992_p8 = scmp.ne.s32.totalorder %s1369_s28, %s991_s20  ;;  %s995_s17 = sshll.u32 %s1078_s22, 4  ;;  %s996_s17 = int_to_ptr.vmem [resolvable:$false] %s995_s17 }
 0x2bd   : > { %s997_s1 = scalar_lea.vmem %s996_s17, 256  ;;  %p998_p1 = scmp.lt.s32.totalorder %s1369_s28, %s996_s17 }
 0x2be   : > { %p993_p13 = pnand %p992_p8, %p1442_p6  ;;  %p999_p10 = scmp.lt.s32.totalorder %s997_s1, %s991_s20 }
 0x2c0   : > { %p994_p11 = pneg %p993_p13  ;;  %p1000_p4 = por %p999_p10, %p998_p1 }
 0x2c2   : > { %p1001_p7 = pnand %p1000_p4, %p994_p11 }
 0x37e   : > { %v525_v18 = vpop.f32.mrb[0].mxu1 }
 0x37f   : > { %529 = vst.msk [vmem:[%s351_s15] sm:$0xff] %vm362_vm1, %v525_v18  ;;  %v770_v19 = vpop.f32.mrb[1].mxu1 }
 0x380   : > { %1004 = shalt.err (!%p1001_p7)
}
 0x381   : > { %s1005_s23 = scalar_lea.hbm %s1367_s8, 128  ;;  %s1009_s6 = scalar_lea.hbm %s1416_s4, 256 }
 0x382   : > { %p1006_p9 = scmp.ne.s32.totalorder %s1367_s8, %s1005_s23  ;;  %p1010_p3 = scmp.lt.u32.totalorder %s1367_s8, %s1416_s4 }
 0x383   : > { %p1011_p12 = scmp.lt.u32.totalorder %s1009_s6, %s1005_s23  ;;  %p1013_p8 = scmp.lt.u32.totalorder %s1005_s23, %s1367_s8 }
 0x384   : > { %p1007_p5 = pnand %p1006_p9, %p1442_p6 }
 0x385   : > { %p1012_p0 = por %p1011_p12, %p1010_p3 }
 0x386   : > { %p1008_p2 = pneg %p1007_p5 }
 0x387   : > { %p1014_p13 = por %p1013_p8, %p1012_p0 }
 0x389   : > { %p1015_p11 = pnand %p1014_p13, %p1008_p2 }
 0x38b   : > { %1018 = shalt.err (!%p1015_p11)
}
 0x38c   : > { %779 = dma.vmem_to_hbm [thread:$0]  (%p1442_p6), %s1369_s28, 128, %s1367_s8, %s531_s27  }
 0x38d PF: > { %s574_s9 = sand.u32 1, %s1057_s18   ;;  %p1443_p1 = scmp.ne.s32.totalorder %s1431_s30, 0 }
 0x38e   : > { %p1444_p10 = scmp.ge.s32.totalorder %s1069_s21, 2  ;;  %s575_s10 = scalar_lea.sflag [#allocation4], %s574_s9 }
 0x390   : > { %p797_p4 = pnand %p1444_p10, %p1443_p1 }
 0x392   : > { %1048 = dma.done.wait (!%p797_p4), %s575_s10, 128  }
 0x393   : > { %1050 = vsyncadd (!%p797_p4), %s575_s10, 4294967168  ;;  %s584_s25 = scalar_lea.sflag [#allocation12], %s574_s9 }
 0x394   : > { %1052 = dma.done.wait (!%p797_p4), %s584_s25, 128  }
 0x395   : > { %1054 = vsyncadd (!%p797_p4), %s584_s25, 4294967168  ;;  %s1445_s21 = sld [smem:[#allocation19_spill]]  ;;  %s1446_s29 = sld [smem:[#allocation18_spill]] }
 0x396   : > { %s1447_s20 = sld [smem:[#allocation20_spill]]  ;;  %s1448_s18 = smov %s1061_s19 }
 0x39b   : > { %p28_p6 = scmp.ge.s32.totalorder %s1445_s21, 4   ;;  %s1449_s19 = smov %s1446_s29 }
 0x39d   :  { %30 = sbr.rel (!%p28_p6) target bundleno = 13 (0xd), region = 135 }
 0x3a4   :  { %589 = vsyncpa [#allocation3], 1 }
 0x3a5   :  { %591 = vsyncpa [#allocation3 + $0x1], 1 }
 0x3a6   :  { %592 = vsyncpa [#allocation6], 1 }
 0x3a7   :  { %594 = vsyncpa [#allocation6 + $0x1], 1 }
 0x3a8   :  { %595 = vsyncpa [#allocation9], 1 }
 0x3a9   :  { %597 = vsyncpa [#allocation9 + $0x1], 1 }
 0x3aa   :  { %598 = vsyncpa [#allocation4], 1 }
 0x3ab   :  { %600 = vsyncpa [#allocation4 + $0x1], 1 }
 0x3ac   :  { %601 = vsyncpa [#allocation12], 1 }
 0x3ad   :  { %603 = vsyncpa [#allocation12 + $0x1], 1 }

</bundles_post_ra>
